<compile_context>
chip_gen: v6e
topology: v6e:2x2x1
jax: 0.10.0
libtpu: 0.0.40
codegen_flags: <defaults>
</compile_context>

<pallas_src>
import functools
import math

import jax
import jax.numpy as jnp
from jax.experimental import pallas as pl
from jax.experimental.pallas import tpu as pltpu

# learnable-swish parameters (one scalar pair per activation instance in the
# ResidualMLP: PreAct1, PreAct2, post-residual activation). Deterministic init.
SWISH_ALPHA = (1.0, 1.0, 1.0)
SWISH_BETA = (1.702, 1.702, 1.702)

# MXU operand dtype (bf16 inputs / f32 accumulation on v5e/v6e/v7x).
MATMUL_DTYPE = jnp.bfloat16
MIN_TILE = 16            # bf16 sublane tiling (16, 128)


def _swish(x, alpha, beta):
    # learnable swish: alpha * x * sigmoid(beta * x), kept in f32 (VPU/EUP).
    return alpha * x * jax.nn.sigmoid(beta * x)


def _softplus(x):
    # numerically stable log(1 + exp(x)) -- exp argument is always <= 0.
    return jnp.maximum(x, 0.0) + jnp.log(1.0 + jnp.exp(-jnp.abs(x)))


# ----------------------------------------------------------------------------
# Kernel A: per-atom softplus numerator
#   num_i = softplus( ((e_z_i @ Wk + bk)[sign(psi)]) / sqrt(F) )
# with Wk = W_lin^T @ [k_plus | k_minus]  (F, 2) folded in the wrapper, so this
# pass is a pure e_z HBM stream plus a tiny (TM,F)@(F,2) bf16 MXU dot.
# ----------------------------------------------------------------------------
def _num_kernel(ez_ref, psi_ref, wk_ref, bk_ref, num_ref, *, inv_sqrt_f):
    arg2 = (jnp.dot(ez_ref[...], wk_ref[...],
                    preferred_element_type=jnp.float32)
            + bk_ref[...]) * inv_sqrt_f                      # (TM, 2) f32
    sel = psi_ref[...] >= 0.0                                # (TM, 1)
    arg = jnp.where(sel, arg2[:, 0:1], arg2[:, 1:2])         # (TM, 1)
    num_ref[...] = _softplus(arg)


# ----------------------------------------------------------------------------
# Kernel B: av = a_i * v_sign, then ResidualMLP (all Dense bias=False)
#   r   = av + swish(swish(av) @ W1) @ W2
#   out = swish(r) @ W3
# The +/- select uses sign(a_i): sign(a_i) == sign(psi) since num, denom > 0;
# at psi == 0, a_i == 0 so av == 0 under either branch (identical output).
# ----------------------------------------------------------------------------
def _resmlp_kernel(a_ref, vpm_ref, w1_ref, w2_ref, w3_ref, out_ref):
    a = a_ref[...]                                           # (TM, 1) f32
    sel = a >= 0.0
    v = jnp.where(sel, vpm_ref[0:1, :], vpm_ref[1:2, :])     # (TM, F) f32
    av = a * v                                               # (TM, F) f32

    h1 = jnp.dot(_swish(av, SWISH_ALPHA[0], SWISH_BETA[0]).astype(w1_ref.dtype),
                 w1_ref[...], preferred_element_type=jnp.float32)
    h2 = jnp.dot(_swish(h1, SWISH_ALPHA[1], SWISH_BETA[1]).astype(w2_ref.dtype),
                 w2_ref[...], preferred_element_type=jnp.float32)
    r = av + h2
    out = jnp.dot(_swish(r, SWISH_ALPHA[2], SWISH_BETA[2]).astype(w3_ref.dtype),
                  w3_ref[...], preferred_element_type=jnp.float32)
    out_ref[...] = out.astype(out_ref.dtype)


# ----------------------------------------------------------------------------
# Wrapper
# ----------------------------------------------------------------------------
def _round_up(x, m):
    return (x + m - 1) // m * m


def _pad_rows(x, n_rows):
    pad = n_rows - x.shape[0]
    if pad > 0:
        x = jnp.pad(x, ((0, pad), (0, 0)))
    return x


def _choose_tile(n, block_rows):
    """Atom-tile rows: big tiles to amortize ~0.35us/grid-step, but keep >= 2
    tiles whenever the problem allows so both v7x TensorCores get work on the
    'parallel' axis (no effect on 1-TC v5e/v6e)."""
    n_ceil = _round_up(max(n, 1), MIN_TILE)
    tm = min(_round_up(block_rows, MIN_TILE), n_ceil)
    if n_ceil >= 2 * MIN_TILE:
        tm = min(tm, _round_up((n + 1) // 2, MIN_TILE))
    return max(tm, MIN_TILE)


def electronic_embedding(psi, e_z, num_atoms, params, *, block_rows=1024,
                         out_dtype=jnp.bfloat16):
    """Pallas-backed forward of ElectronicEmbedding.

    psi:       (n_mol,)   molecular charge / spin (one per molecule)
    e_z:       (N, F)     atomic feature embeddings
    num_atoms: (n_mol,)   atoms per molecule (sum == N)
    """
    N, F = e_z.shape
    n_mol = num_atoms.shape[0]

    # --- segment bookkeeping (plain JAX, O(N) scalars) ---
    seg = jnp.repeat(jnp.arange(n_mol), num_atoms, total_repeat_length=N)
    psi_atom = psi[seg].astype(jnp.float32).reshape(N, 1)

    # --- tiling over atoms ---
    tm = _choose_tile(N, block_rows)
    n_pad = _round_up(N, tm)
    grid = (n_pad // tm,)

    ez_p = _pad_rows(e_z.astype(MATMUL_DTYPE), n_pad)    # bf16 activation stream
    psi_p = _pad_rows(psi_atom, n_pad)

    # Fold the q projection into the key matrix (q only ever contracts with k):
    #   q @ [k+|k-] == e_z @ (W_lin^T @ [k+|k-]) + b @ [k+|k-]
    wk = (params['w_lin_t'] @ params['kpm_t']).astype(MATMUL_DTYPE)   # (F, 2)
    bk = (params['b_lin'] @ params['kpm_t']).astype(jnp.float32)      # (1, 2)

    vpm = params['vpm'].astype(jnp.float32)                            # (2, F)
    w1 = params['w1_t'].astype(MATMUL_DTYPE)
    w2 = params['w2_t'].astype(MATMUL_DTYPE)
    w3 = params['w3_t'].astype(MATMUL_DTYPE)

    # NOTE(v7x): 32 MiB scoped VMEM is ample at F=128; re-derive (not copy) the
    # budget against 64 MiB physical per TC if F or block_rows grow.
    cparams = pltpu.CompilerParams(
        dimension_semantics=("parallel",),
        vmem_limit_bytes=32 * 1024 * 1024,
    )

    def row_spec(width):
        return pl.BlockSpec((tm, width), lambda i: (i, 0))

    def const_spec(shape):
        # Resident across atom tiles (constant block index).
        # TODO(synk): for F >= 512, pass pipeline_mode=pl.Buffered(1) here to
        # stop double-buffering the resident weights (matters on v7x 64 MiB).
        return pl.BlockSpec(shape, lambda i: (0, 0))

    # --- pass 1: per-atom softplus numerator (pure e_z HBM stream) ---
    num = pl.pallas_call(
        functools.partial(_num_kernel, inv_sqrt_f=1.0 / math.sqrt(F)),
        out_shape=jax.ShapeDtypeStruct((n_pad, 1), jnp.float32),
        grid=grid,
        in_specs=[row_spec(F), row_spec(1),
                  const_spec((F, 2)), const_spec((1, 2))],
        out_specs=row_spec(1),
        compiler_params=cparams,
    )(ez_p, psi_p, wk, bk)

    # --- glue: per-molecule denominator, broadcast back to atoms (O(N)) ---
    # Padded rows carry garbage numerators: slice them off BEFORE the segment
    # sum.  Padded a_i rows are 0, so pass-2 padded rows are exact zeros.
    num = num[:N, 0]
    denom_mol = jax.ops.segment_sum(num, seg, num_segments=n_mol)
    a_i = (psi_atom[:, 0] * num / denom_mol[seg]).reshape(N, 1)
    a_i = _pad_rows(a_i, n_pad)

    # --- pass 2: av = a_i * v, ResidualMLP (MXU-bound pass; large TM helps) ---
    out = pl.pallas_call(
        _resmlp_kernel,
        out_shape=jax.ShapeDtypeStruct((n_pad, F), out_dtype),
        grid=grid,
        in_specs=[row_spec(1), const_spec((2, F)),
                  const_spec((F, F)), const_spec((F, F)), const_spec((F, F))],
        out_specs=row_spec(F),
        compiler_params=cparams,
    )(a_i, vpm, w1, w2, w3)

    return out[:N]


# ----------------------------------------------------------------------------
# Pure-JAX reference (mirrors the PyTorch per-molecule loop, f32 throughout,
# uses the UNFOLDED weights so the wrapper-side fold is exercised).
# ----------------------------------------------------------------------------
def reference(psi, e_z, num_atoms, params):
    F = e_z.shape[1]
    q = e_z @ params['w_lin_t'] + params['b_lin'].reshape(-1)
    outs = []
    start = 0
    for j in range(num_atoms.shape[0]):
        n = int(num_atoms[j])
        mol_q = q[start:start + n]
        mol_psi = psi[j]
        col = 0 if float(mol_psi) >= 0 else 1
        k = params['kpm_t'][:, col]                 # (F,)
        arg = mol_q @ k / F ** 0.5                  # (n,)
        num = _softplus(arg)                        # == log(1 + exp(arg)), stable form
        denom = num.sum()
        a_i = mol_psi * num / denom
        v = params['vpm'][col]
        av = a_i.reshape(-1, 1) * v.reshape(1, -1)  # (n, F)
        h1 = _swish(av, SWISH_ALPHA[0], SWISH_BETA[0]) @ params['w1_t']
        h2 = _swish(h1, SWISH_ALPHA[1], SWISH_BETA[1]) @ params['w2_t']
        r = av + h2
        outs.append(_swish(r, SWISH_ALPHA[2], SWISH_BETA[2]) @ params['w3_t'])
        start += n
    return jnp.concatenate(outs, axis=0)


def init_params(key, feat_dim):
    # Deterministic synthetic init. NOTE: the torch module zero-initialises
    # k_plus/k_minus/v_plus/v_minus and the final residual layer; we use small
    # random values instead so the kernel exercises non-trivial compute.
    # All Dense weights are stored PRE-TRANSPOSED as (in_features, out_features)
    # so y = x @ W_t (+ b) == torch's x @ W.T + b with no in-kernel transpose.
    ks = jax.random.split(key, 7)
    s = 0.1
    return {
        'w_lin_t': s * jax.random.normal(ks[0], (feat_dim, feat_dim), jnp.float32),
        'b_lin':   s * jax.random.normal(ks[1], (1, feat_dim), jnp.float32),
        # column 0 = k_plus, column 1 = k_minus  (torch shape (F,1) each)
        'kpm_t':   s * jax.random.normal(ks[2], (feat_dim, 2), jnp.float32),
        # row 0 = v_plus, row 1 = v_minus
        'vpm':     s * jax.random.normal(ks[3], (2, feat_dim), jnp.float32),
        'w1_t':    s * jax.random.normal(ks[4], (feat_dim, feat_dim), jnp.float32),
        'w2_t':    s * jax.random.normal(ks[5], (feat_dim, feat_dim), jnp.float32),
        'w3_t':    s * jax.random.normal(ks[6], (feat_dim, feat_dim), jnp.float32),
    }


if __name__ == "__main__":
    key = jax.random.PRNGKey(0)
    # feat_dim = 128 keeps activations / output lane-dense (multiple of 128).
    feat_dim = 128
    num_atoms = jnp.array([40, 56, 24, 8], dtype=jnp.int32)   # 4 molecules, 128 atoms
    n_total = int(num_atoms.sum())

    k_psi, k_ez, k_par = jax.random.split(key, 3)
    psi = jnp.array([1.5, -0.5, 0.8, 2.0], dtype=jnp.float32)        # one per molecule
    e_z = jax.random.normal(k_ez, (n_total, feat_dim), jnp.float32)  # atomic embeddings
    params = init_params(k_par, feat_dim)

    # block_rows=32 -> 4 atom tiles: testing only (exercises the pipelined
    # multi-tile grid).  Production should use the default block_rows=1024.
    out = electronic_embedding(psi, e_z, num_atoms, params, block_rows=32)
    out = jax.block_until_ready(out)

    ref = reference(psi, e_z, num_atoms, params)
    assert out.shape == (n_total, feat_dim)
    assert out.dtype == jnp.bfloat16
    # bf16 MXU operands / bf16 output vs f32 reference -> loosened tolerance.
    assert jnp.allclose(out.astype(jnp.float32), ref, rtol=5e-2, atol=1e-3), \
        "mismatch vs reference"

    print("KERNEL_OK")
</pallas_src>

<mosaic_0001>
module attributes {stable_mosaic.version = 11 : i64} {
  func.func @_num_kernel(%arg0: i32, %arg1: memref<32x128xbf16, #tpu.memory_space<vmem>>, %arg2: memref<32x1xf32, #tpu.memory_space<vmem>>, %arg3: memref<128x2xbf16, #tpu.memory_space<vmem>>, %arg4: memref<1x2xf32, #tpu.memory_space<vmem>>, %arg5: memref<32x1xf32, #tpu.memory_space<vmem>>) attributes {dimension_semantics = [#tpu.dimension_semantics<parallel>], iteration_bounds = array<i64: 4>, scalar_prefetch = 0 : i64, scratch_operands = 0 : i64, tpu.core_type = #tpu.core_type<tc>, window_params = [{transform_indices = @transform_0, window_bounds = array<i64: 32, 128>}, {transform_indices = @transform_1, window_bounds = array<i64: 32, 1>}, {pipeline_mode = #tpu.pipeline_mode<synchronous>, transform_indices = @transform_2, window_bounds = array<i64: 128, 2>}, {pipeline_mode = #tpu.pipeline_mode<synchronous>, transform_indices = @transform_3, window_bounds = array<i64: 1, 2>}, {transform_indices = @transform_4, window_bounds = array<i64: 32, 1>}]} {
    %c0 = arith.constant 0 : index
    %c0_0 = arith.constant 0 : index
    %0 = vector.load %arg1[%c0, %c0_0] : memref<32x128xbf16, #tpu.memory_space<vmem>>, vector<32x128xbf16>
    %c0_1 = arith.constant 0 : index
    %c0_2 = arith.constant 0 : index
    %1 = vector.load %arg3[%c0_1, %c0_2] : memref<128x2xbf16, #tpu.memory_space<vmem>>, vector<128x2xbf16>
    %cst = arith.constant dense<0.000000e+00> : vector<32x2xf32>
    %2 = tpu.matmul %0, %1, %cst {dimension_numbers = #tpu.dot_dimension_numbers<[1], [0], [0], [1], [0, 0, 1, 1], [], []>} : vector<32x128xbf16>, vector<128x2xbf16>, vector<32x2xf32> -> vector<32x2xf32>
    %c0_3 = arith.constant 0 : index
    %c0_4 = arith.constant 0 : index
    %3 = vector.load %arg4[%c0_3, %c0_4] : memref<1x2xf32, #tpu.memory_space<vmem>>, vector<1x2xf32>
    %4 = vector.broadcast %3 : vector<1x2xf32> to vector<32x2xf32>
    %5 = arith.addf %2, %4 : vector<32x2xf32>
    %cst_5 = arith.constant 0.0883883461 : f32
    %6 = vector.broadcast %cst_5 : f32 to vector<32x2xf32>
    %7 = arith.mulf %5, %6 : vector<32x2xf32>
    %c0_6 = arith.constant 0 : index
    %c0_7 = arith.constant 0 : index
    %8 = vector.load %arg2[%c0_6, %c0_7] : memref<32x1xf32, #tpu.memory_space<vmem>>, vector<32x1xf32>
    %cst_8 = arith.constant 0.000000e+00 : f32
    %9 = vector.broadcast %cst_8 : f32 to vector<32x1xf32>
    %10 = arith.cmpf oge, %8, %9 : vector<32x1xf32>
    %11 = vector.extract_strided_slice %7 {offsets = [0, 0], sizes = [32, 1], strides = [1, 1]} : vector<32x2xf32> to vector<32x1xf32>
    %12 = vector.extract_strided_slice %7 {offsets = [0, 1], sizes = [32, 1], strides = [1, 1]} : vector<32x2xf32> to vector<32x1xf32>
    %13 = arith.select %10, %11, %12 : vector<32x1xi1>, vector<32x1xf32>
    %cst_9 = arith.constant 0.000000e+00 : f32
    %14 = vector.broadcast %cst_9 : f32 to vector<32x1xf32>
    %15 = arith.maximumf %13, %14 : vector<32x1xf32>
    %16 = math.absf %13 : vector<32x1xf32>
    %cst_10 = arith.constant 0.000000e+00 : f32
    %17 = vector.broadcast %cst_10 : f32 to vector<32x1xf32>
    %18 = arith.subf %17, %16 : vector<32x1xf32>
    %19 = math.exp %18 : vector<32x1xf32>
    %cst_11 = arith.constant 1.000000e+00 : f32
    %20 = vector.broadcast %cst_11 : f32 to vector<32x1xf32>
    %21 = arith.addf %20, %19 : vector<32x1xf32>
    %22 = math.log %21 : vector<32x1xf32>
    %23 = arith.addf %15, %22 : vector<32x1xf32>
    %c0_12 = arith.constant 0 : index
    %c0_13 = arith.constant 0 : index
    %24 = vector.load %arg5[%c0_12, %c0_13] : memref<32x1xf32, #tpu.memory_space<vmem>>, vector<32x1xf32>
    tpu.vector_store %arg5[%c0_12, %c0_13], %23 {strides = array<i32>} : memref<32x1xf32, #tpu.memory_space<vmem>>, vector<32x1xf32>,
    return
  }
  func.func @transform_0(%arg0: i32) -> (i32, i32) {
    %c0_i32 = arith.constant 0 : i32
    %c0_i32_0 = arith.constant 0 : i32
    return %arg0, %c0_i32 : i32, i32
  }
  func.func @transform_1(%arg0: i32) -> (i32, i32) {
    %c0_i32 = arith.constant 0 : i32
    %c0_i32_0 = arith.constant 0 : i32
    return %arg0, %c0_i32 : i32, i32
  }
  func.func @transform_2(%arg0: i32) -> (i32, i32) {
    %c0_i32 = arith.constant 0 : i32
    %c0_i32_0 = arith.constant 0 : i32
    %c0_i32_1 = arith.constant 0 : i32
    return %c0_i32, %c0_i32_0 : i32, i32
  }
  func.func @transform_3(%arg0: i32) -> (i32, i32) {
    %c0_i32 = arith.constant 0 : i32
    %c0_i32_0 = arith.constant 0 : i32
    %c0_i32_1 = arith.constant 0 : i32
    return %c0_i32, %c0_i32_0 : i32, i32
  }
  func.func @transform_4(%arg0: i32) -> (i32, i32) {
    %c0_i32 = arith.constant 0 : i32
    %c0_i32_0 = arith.constant 0 : i32
    return %arg0, %c0_i32 : i32, i32
  }
}

</mosaic_0001>

<bundles_post_ra>
// kernel: tpu_custom_call.1
= control target key start
LH: loop header
LB: loop body
LE: loop exit
PB: predicated region body
PF: predicated region fallthrough
CT: control target
= control target key end

     0   :  { %s624_s15 = smov 0   ;;  %s683_s0 = inlined_call_operand.vmem [shape: bf16[128,128], index: 0, kind: input, shape index: {}]   ;;  %s684_s1 = inlined_call_operand.vmem [shape: f32[128,1], index: 1, kind: input, shape index: {}]   ;;  %s685_s2 = inlined_call_operand.vmem [shape: bf16[128,2], index: 2, kind: input, shape index: {}]   ;;  %s686_s3 = inlined_call_operand.vmem [shape: f32[1,2], index: 3, kind: input, shape index: {}]   ;;  %s687_s4 = inlined_call_operand.vmem [shape: f32[128,1], index: 4, kind: output, shape index: {}]  }
   0x1 LB: > { %s501_s16 = sadd.s32 4294967295, %s596_s15   ;;  %p505_p0 = scmp.ge.s32.totalorder %s596_s15, 1  ;;  %s596_s15 = sphi %s624_s15, %s14_s15  }
   0x2   : > { %p174_p1 = scmp.lt.s32.totalorder %s596_s15, 5 }
   0x4   : > { %p175_p2 = pnand %p505_p0, %p174_p1 }
   0x5   : > { %s506_s19 = sshll.u32 (!%p175_p2), %s501_s16, 2  ;;  %s598_s14 = smov (!%p175_p2), 127  }
   0x6   : > { %178 = sbr.rel (%p175_p2) target bundleno = 404 (0x194), region = 36  ;;  %p206_p3 = scmp.lt.s32.totalorder (!%p175_p2), %s506_s19, 15 }
   0xb   : > { %v564_v0 = vld [vmem:[%s685_s2 + $0x38] sm:$0xff]   ;;  %v565_v1 = vld [vmem:[%s685_s2 + $0x30] sm:$0xff]   ;;  %s689_s19 = smov (!%p206_p3, %s506_s19), 15  ;;  %v566_v2 = vld [vmem:[%s685_s2 + $0x28] sm:$0xff]   ;;  %vm428_vm4 = vcmask 7168  }
   0xc   : > { %535 = vmatprep.subr.bf16.mxu0 %v564_v0  ;;  %s507_s24 = sshll.u32 %s689_s19, 2  ;;  %v567_v3 = vld [vmem:[%s685_s2 + $0x20] sm:$0xff]   ;;  %v568_v5 = vld [vmem:[%s685_s2 + $0x18] sm:$0xff]   ;;  %v569_v6 = vld [vmem:[%s685_s2 + $0x10] sm:$0xff]   ;;  %s509_s16 = sshll.u32 %s689_s19, 3 }
   0xd   : > { %536 = vmatpush3.bf16.msra.mxu0 %v564_v0  ;;  %s209_s27 = scalar_lea.vmem %s683_s0, %s507_s24  ;;  %v570_v7 = vld [vmem:[%s685_s2 + $0x8] sm:$0xff]   ;;  %v571_v8 = vld [vmem:[%s685_s2] sm:$0xff]   ;;  %s215_s20 = scalar_lea.vmem %s684_s1, %s509_s16 }
   0xe   : > { %537 = vmatprep.subr.bf16.mxu0 %v565_v1  ;;  %v572_v4 = vld [vmem:[%s209_s27] sm:$0xff]   ;;  %v573_v9 = vld [vmem:[%s209_s27 + $0x8] sm:$0xff]   ;;  %v366_v23 = vld [vmem:[%s215_s20 + $0x10] sm:$0xff]  ;;  %s221_s23 = scalar_lea.vmem %s687_s4, %s509_s16 }
   0xf   : > { %551 = vmatprep.mubr.bf16.mxu0 %v572_v4  ;;  %v512_v10 = vld [vmem:[%s686_s3] ss:$0 sm:$0xff]  ;;  %vm370_vm0 = vcmp.ge.f32.partialorder %v366_v23, 0.0  ;;  %v367_v25 = vld [vmem:[%s215_s20 + $0x18] sm:$0xff]  ;;  %v365_v28 = vld [vmem:[%s215_s20 + $0x8] sm:$0xff] }
  0x10   : > { %v364_v24 = vld [vmem:[%s215_s20] sm:$0xff]  ;;  %vm371_vm2 = vcmp.ge.f32.partialorder %v367_v25, 0.0  ;;  %vm369_vm3 = vcmp.ge.f32.partialorder %v365_v28, 0.0 }
  0x11   : > { %538 = vmatpush3.bf16.msra.mxu0 %v565_v1  ;;  %vm368_vm1 = vcmp.ge.f32.partialorder %v364_v24, 0.0 }
  0x12   : > { %539 = vmatprep.subr.bf16.mxu0 %v566_v2 }
  0x15   : > { %540 = vmatpush3.bf16.msra.mxu0 %v566_v2 }
  0x16   : > { %541 = vmatprep.subr.bf16.mxu0 %v567_v3 }
  0x19   : > { %542 = vmatpush3.bf16.msra.mxu0 %v567_v3 }
  0x1a   : > { %543 = vmatprep.subr.bf16.mxu0 %v568_v5 }
  0x1d   : > { %544 = vmatpush3.bf16.msra.mxu0 %v568_v5 }
  0x1e   : > { %545 = vmatprep.subr.bf16.mxu0 %v569_v6 }
  0x21   : > { %546 = vmatpush3.bf16.msra.mxu0 %v569_v6 }
  0x22   : > { %547 = vmatprep.subr.bf16.mxu0 %v570_v7 }
  0x25   : > { %548 = vmatpush3.bf16.msra.mxu0 %v570_v7 }
  0x26   : > { %549 = vmatprep.subr.bf16.mxu0 %v571_v8 }
  0x29   : > { %550 = vmatpush3.bf16.msra.mxu0 %v571_v8 }
  0x2c   : > { %552 = vmatmul.mubr.bf16.vlgmr.msra.gmra.mxu0 %v573_v9 }
  0xec   : > { %v553_v11 = vpop.f32.mrf.mxu0 }
  0xed   : > { %v354_v12 = vadd.f32 %v553_v11, %v512_v10 }
  0xee   : > { %v345_v13 = vpop.f32.mrf.mxu0 }
  0xef   : > { %v362_v14 = vmul.f32 0.088388346, %v354_v12  ;;  %v346_v15 = vadd.f32 %v512_v10, %v345_v13 }
  0xf0   : > { %v554_v16 = vpop.f32.mrf.mxu0 }
  0xf1   : > { %v360_v17 = vmul.f32 0.088388346, %v346_v15  ;;  %v357_v18 = vadd.f32 %v554_v16, %v512_v10  ;;  %380 = vrot.lane.b32.xlu1 %v362_v14, %s598_s14 }
  0xf2   : > { %v348_v19 = vpop.f32.mrf.mxu0 }
  0xf3   : > { %v363_v20 = vmul.f32 0.088388346, %v357_v18  ;;  %v349_v21 = vadd.f32 %v512_v10, %v348_v19  ;;  %376 = vrot.lane.b32.xlu0 %v360_v17, %s598_s14 }
  0xf5   : > { %v361_v22 = vmul.f32 0.088388346, %v349_v21  ;;  %382 = vrot.lane.b32.xlu1 %v363_v20, %s598_s14 }
  0xf7   : > { %378 = vrot.lane.b32.xlu0 %v361_v22, %s598_s14 }
 0x163   : > { %v381_v26 = vpop.permute.xlu1 %380 }
 0x164   : > { %v390_v27 = vsel %vm370_vm0, %v362_v14, %v381_v26 }
 0x165   : > { %v398_v29 = vand.u32 2147483647, %v390_v27  ;;  %v377_v30 = vpop.permute.xlu0 %376  ;;  %v394_v56 = vmax.f32 %v390_v27, 0.0 }
 0x166   : > { %v388_v31 = vsel %vm368_vm1, %v360_v17, %v377_v30 }
 0x167   : > { %v402_v32 = vsub.f32 0.0, %v398_v29  ;;  %v396_v33 = vand.u32 2147483647, %v388_v31  ;;  %v383_v34 = vpop.permute.xlu1 %382  ;;  %v392_v60 = vmax.f32 %v388_v31, 0.0 }
 0x168   : > { %v391_v35 = vsel %vm371_vm2, %v363_v20, %v383_v34 }
 0x169   : > { %v408_v36 = vmul.f32 1.442695, %v402_v32  ;;  %v400_v37 = vsub.f32 0.0, %v396_v33  ;;  %v399_v38 = vand.u32 2147483647, %v391_v35  ;;  %v379_v39 = vpop.permute.xlu0 %378  ;;  %v395_v0 = vmax.f32 %v391_v35, 0.0 }
 0x16a   : > { %v389_v40 = vsel %vm369_vm3, %v361_v22, %v379_v39 }
 0x16b   : > { %574 = vpow2.f32 %v408_v36  ;;  %v404_v41 = vmul.f32 1.442695, %v400_v37  ;;  %v403_v42 = vsub.f32 0.0, %v399_v38  ;;  %v397_v43 = vand.u32 2147483647, %v389_v40 }
 0x16c   : > { %v393_v4 = vmax.f32 %v389_v40, 0.0 }
 0x16d   : > { %576 = vpow2.f32 %v404_v41  ;;  %v410_v44 = vmul.f32 1.442695, %v403_v42  ;;  %v401_v45 = vsub.f32 0.0, %v397_v43 }
 0x16f   : > { %578 = vpow2.f32 %v410_v44  ;;  %v406_v46 = vmul.f32 1.442695, %v401_v45 }
 0x171   : > { %580 = vpow2.f32 %v406_v46 }
 0x178   : > { %v575_v47 = vpop.eup %574 }
 0x179   : > { %v414_v48 = vadd.f32 1.0, %v575_v47 }
 0x17a   : > { %v577_v49 = vpop.eup %576 }
 0x17b   : > { %582 = vlog2.f32 %v414_v48  ;;  %v412_v50 = vadd.f32 1.0, %v577_v49 }
 0x17c   : > { %v579_v51 = vpop.eup %578 }
 0x17d   : > { %584 = vlog2.f32 %v412_v50  ;;  %v415_v52 = vadd.f32 1.0, %v579_v51 }
 0x17e   : > { %v581_v53 = vpop.eup %580 }
 0x17f   : > { %586 = vlog2.f32 %v415_v52  ;;  %v413_v54 = vadd.f32 1.0, %v581_v53 }
 0x181   : > { %588 = vlog2.f32 %v413_v54 }
 0x188   : > { %v583_v55 = vpop.eup %582 }
 0x189   : > { %v421_v57 = vmul.f32 0.6931472, %v583_v55 }
 0x18a   : > { %v585_v58 = vpop.eup %584 }
 0x18b   : > { %v426_v59 = vadd.f32 %v421_v57, %v394_v56  ;;  %v417_v61 = vmul.f32 0.6931472, %v585_v58 }
 0x18c   : > { %v587_v62 = vpop.eup %586 }
 0x18d   : > { %431 = vst.msk [vmem:[%s221_s23 + $0x10] sm:$0xff] %vm428_vm4, %v426_v59  ;;  %v424_v63 = vadd.f32 %v417_v61, %v392_v60  ;;  %v423_v1 = vmul.f32 0.6931472, %v587_v62 }
 0x18e   : > { %v589_v2 = vpop.eup %588 }
 0x18f   : > { %429 = vst.msk [vmem:[%s221_s23] sm:$0xff] %vm428_vm4, %v424_v63  ;;  %v427_v3 = vadd.f32 %v423_v1, %v395_v0  ;;  %v419_v5 = vmul.f32 0.6931472, %v589_v2 }
 0x191   : > { %432 = vst.msk [vmem:[%s221_s23 + $0x18] sm:$0xff] %vm428_vm4, %v427_v3  ;;  %v425_v6 = vadd.f32 %v419_v5, %v393_v4 }
 0x193   : > { %430 = vst.msk [vmem:[%s221_s23 + $0x8] sm:$0xff] %vm428_vm4, %v425_v6 }
 0x194 PF: > { %s14_s15 = sadd.s32 1, %s596_s15  }
 0x195   : > { %p11_p4 = scmp.ge.s32.totalorder %s14_s15, 6  }
 0x197   :  { %13 = sbr.rel (!%p11_p4) target bundleno = 1 (0x1), region = 69 }

</bundles_post_ra>
